<compile_context>
chip_gen: v7x
topology: tpu7x:2x2x1
jax: 0.10.0
libtpu: 0.0.40
codegen_flags: <defaults>
</compile_context>

<pallas_src>
import functools

import jax
import jax.numpy as jnp
from jax import lax
from jax.experimental import pallas as pl
from jax.experimental.pallas import tpu as pltpu


VMEM_LIMIT = 32 * 1024 * 1024  # explicit scoped-VMEM budget; safe on v5e/v6e/v7x


# ----------------------------------------------------------------------------- helpers
def _tile(dim, cap, align, must_divide=False):
    """Pick a tile for `dim`: full dim if <= cap, else an `align`-multiple <= cap.

    Prefers an exact divisor (no ragged edge); for non-reduction axes it falls back to a
    ragged (masked) final block rather than a tiny divisor.  Reduction axes (must_divide)
    fall back to the full dim so no garbage enters the accumulator.
    """
    if dim <= cap:
        return dim
    best = max(align, (cap // align) * align)
    t = best
    while t >= align and dim % t != 0:
        t -= align
    if t >= align and dim % t == 0 and (must_divide or 2 * t >= best):
        return t
    return dim if must_divide else best


def _erf(x):
    # Abramowitz & Stegun 7.1.26 rational approximation (max abs err ~1.5e-7).
    # Keeps exact-GELU (erf) semantics without relying on an erf lowering in Mosaic.
    p = 0.3275911
    a1, a2, a3, a4, a5 = 0.254829592, -0.284496736, 1.421413741, -1.453152027, 1.061405429
    ax = jnp.abs(x)
    t = 1.0 / (1.0 + p * ax)
    poly = ((((a5 * t + a4) * t + a3) * t + a2) * t + a1) * t
    y = 1.0 - poly * jnp.exp(-ax * ax)
    return jnp.where(x >= 0, y, -y)


# ----------------------------------------------------------------------------- LayerNorm + Linear (+GELU)
def _ln_linear_kernel(x_ref, lnw_ref, lnb_ref, w_ref, b_ref, o_ref, *, eps, activation):
    # LayerNorm in f32 over the full K row (cheap VPU/EUP work, hidden under the MXU;
    # the x block is not re-DMA'd across Nout tiles since its block index is unchanged).
    x = x_ref[...].astype(jnp.float32)                               # (tm, K)
    mu = jnp.mean(x, axis=-1, keepdims=True)
    xc = x - mu
    var = jnp.mean(xc * xc, axis=-1, keepdims=True)
    h = xc * lax.rsqrt(var + eps)
    h = h * lnw_ref[...].astype(jnp.float32) + lnb_ref[...].astype(jnp.float32)
    h = h.astype(w_ref.dtype)                                        # native-dtype MXU operands
    acc = jnp.dot(h, w_ref[...], preferred_element_type=jnp.float32)  # (tm, tn) f32
    acc = acc + b_ref[...].astype(jnp.float32)
    if activation == "gelu":
        acc = 0.5 * acc * (1.0 + _erf(acc * 0.7071067811865476))     # exact GELU (erf)
    o_ref[...] = acc.astype(o_ref.dtype)


def ln_linear(x2, ln_w, ln_b, w, b, activation=None, eps=1e-5):
    """out = act(LayerNorm(x2) @ w + b).   x2: (M, K); w: (K, Nout); b: (Nout,)."""
    M, K = x2.shape
    Nout = w.shape[1]
    tm = _tile(M, 256, 8)
    tn = _tile(Nout, 512, 128)
    grid = (pl.cdiv(M, tm), pl.cdiv(Nout, tn))
    return pl.pallas_call(
        functools.partial(_ln_linear_kernel, eps=eps, activation=activation),
        out_shape=jax.ShapeDtypeStruct((M, Nout), x2.dtype),
        grid=grid,
        in_specs=[
            pl.BlockSpec((tm, K), lambda i, j: (i, 0)),
            pl.BlockSpec((1, K), lambda i, j: (0, 0)),
            pl.BlockSpec((1, K), lambda i, j: (0, 0)),
            pl.BlockSpec((K, tn), lambda i, j: (0, j)),
            pl.BlockSpec((1, tn), lambda i, j: (0, j)),
        ],
        out_specs=pl.BlockSpec((tm, tn), lambda i, j: (i, j)),
        compiler_params=pltpu.CompilerParams(
            dimension_semantics=("parallel", "parallel"),
            vmem_limit_bytes=VMEM_LIMIT),
    )(x2, ln_w.reshape(1, K), ln_b.reshape(1, K), w, b.reshape(1, Nout))


# ----------------------------------------------------------------------------- Linear + residual + DropPath
def _linear_residual_kernel(x_ref, w_ref, b_ref, res_ref, s_ref, o_ref, acc_ref):
    k = pl.program_id(2)

    @pl.when(k == 0)
    def _():
        acc_ref[...] = jnp.zeros_like(acc_ref)

    acc_ref[...] += jnp.dot(x_ref[...], w_ref[...], preferred_element_type=jnp.float32)

    @pl.when(k == pl.num_programs(2) - 1)
    def _():
        # All epilogue math in f32; single cast at the store (bf16-safe DropPath scaling).
        y = acc_ref[...] + b_ref[...].astype(jnp.float32)
        y = y * s_ref[...].astype(jnp.float32)           # (tm,1) per-row stochastic-depth scale
        o_ref[...] = (res_ref[...].astype(jnp.float32) + y).astype(o_ref.dtype)


def linear_residual_droppath(x2, w, b, residual2, row_scale):
    """out = residual2 + row_scale * (x2 @ w + b).  Gamma (LayerScale) already folded into w, b."""
    M, K = x2.shape
    Nout = w.shape[1]
    tm = _tile(M, 256, 8)
    tn = _tile(Nout, 512, 128)
    tk = _tile(K, 1024, 128, must_divide=True)           # reduction axis: exact divisor or full K
    grid = (pl.cdiv(M, tm), pl.cdiv(Nout, tn), K // tk)
    # TODO(synk): add input_output_aliases={3: 0} when the caller can donate the residual buffer.
    return pl.pallas_call(
        _linear_residual_kernel,
        out_shape=jax.ShapeDtypeStruct((M, Nout), residual2.dtype),
        grid=grid,
        in_specs=[
            pl.BlockSpec((tm, tk), lambda i, j, k: (i, k)),
            pl.BlockSpec((tk, tn), lambda i, j, k: (k, j)),
            pl.BlockSpec((1, tn), lambda i, j, k: (0, j)),
            pl.BlockSpec((tm, tn), lambda i, j, k: (i, j)),
            pl.BlockSpec((tm, 1), lambda i, j, k: (i, 0)),
        ],
        out_specs=pl.BlockSpec((tm, tn), lambda i, j, k: (i, j)),
        scratch_shapes=[pltpu.VMEM((tm, tn), jnp.float32)],
        compiler_params=pltpu.CompilerParams(
            dimension_semantics=("parallel", "parallel", "arbitrary"),
            vmem_limit_bytes=VMEM_LIMIT),
    )(x2, w, b.reshape(1, Nout), residual2, row_scale)


# ----------------------------------------------------------------------------- Attention core
def _attention_kernel(q_ref, k_ref, v_ref, o_ref, *, scale, num_heads):
    # q_ref/k_ref/v_ref view: (H, N, D) for one batch element.  Per-head matmuls feed the MXU
    # native-dtype operands with f32 accumulation; softmax stays in f32; the per-head outputs
    # are concatenated along lanes so the store is a single lane-dense (N, H*D) write.
    outs = []
    for h in range(num_heads):
        q = q_ref[h]                                                   # (N, D), native dtype
        k = k_ref[h]
        v = v_ref[h]
        s = lax.dot_general(q, k, (((1,), (1,)), ((), ())),            # q @ k^T -> (N, N) f32
                            preferred_element_type=jnp.float32)
        s = s * scale
        s = s - jnp.max(s, axis=-1, keepdims=True)
        p = jnp.exp(s)
        denom = jnp.sum(p, axis=-1, keepdims=True)
        p = p * pl.reciprocal(denom, approx=True)                      # EUP, off the VALU
        o = jnp.dot(p.astype(v.dtype), v, preferred_element_type=jnp.float32)  # (N, D)
        outs.append(o)
    o_ref[...] = jnp.concatenate(outs, axis=-1).astype(o_ref.dtype)    # (N, H*D)


def attention_core(q, k, v, scale):
    """q, k, v: (B, H, N, D) -> context in (B, N, H*D) layout (proj-ready, no XLA transpose)."""
    B, H, N, D = q.shape
    qkv_spec = pl.BlockSpec((None, H, N, D), lambda b: (b, 0, 0, 0))
    # TODO(synk): for long sequences (large N) switch to flash-style KV tiling with online
    # softmax so the f32 (N, N) score tile stays bounded on v7x's 64 MiB VMEM.
    return pl.pallas_call(
        functools.partial(_attention_kernel, scale=scale, num_heads=H),
        out_shape=jax.ShapeDtypeStruct((B, N, H * D), q.dtype),
        grid=(B,),
        in_specs=[qkv_spec, qkv_spec, qkv_spec],
        out_specs=pl.BlockSpec((None, N, H * D), lambda b: (b, 0, 0)),
        compiler_params=pltpu.CompilerParams(
            dimension_semantics=("parallel",),
            vmem_limit_bytes=VMEM_LIMIT),
    )(q, k, v)


# ----------------------------------------------------------------------------- Block module
class Block:
    """JAX/Pallas port of the PyTorch `Block` (pre-norm ViT block, LayerScale + DropPath)."""

    def __init__(self, dim, num_heads, mlp_ratio=4.0, qkv_bias=False, qk_scale=None,
                 drop=0.0, attn_drop=0.0, drop_path=0.0, init_values=0.0,
                 attn_head_dim=None, key=None, dtype=jnp.float32):
        self.dim = dim
        self.num_heads = num_heads
        head_dim = dim // num_heads if attn_head_dim is None else attn_head_dim
        self.head_dim = head_dim
        self.all_head_dim = head_dim * num_heads
        self.scale = qk_scale or head_dim ** (-0.5)
        self.drop_path_prob = drop_path
        self.training = True
        hidden = int(dim * mlp_ratio)
        # TODO(synk): nn.Dropout(attn_drop/proj_drop/drop) with p>0 not implemented (p=0 -> identity).

        if key is None:
            key = jax.random.PRNGKey(0)
        ks = jax.random.split(key, 8)
        init = lambda k, shape: (0.15 * jax.random.normal(k, shape, jnp.float32)).astype(dtype)

        self.ln1_w = jnp.ones((dim,), dtype); self.ln1_b = jnp.zeros((dim,), dtype)
        self.ln2_w = jnp.ones((dim,), dtype); self.ln2_b = jnp.zeros((dim,), dtype)
        # weights stored as (in_features, out_features) so kernels compute x @ W
        self.qkv_w = init(ks[0], (dim, 3 * self.all_head_dim))
        if qkv_bias:
            self.q_bias = init(ks[1], (self.all_head_dim,))
            self.v_bias = init(ks[2], (self.all_head_dim,))
        else:
            self.q_bias = None
            self.v_bias = None
        self.proj_w = init(ks[3], (self.all_head_dim, dim))
        self.proj_b = init(ks[4], (dim,))
        self.fc1_w = init(ks[5], (dim, hidden)); self.fc1_b = init(ks[6], (hidden,))
        self.fc2_w = init(ks[7], (hidden, dim)); self.fc2_b = jnp.zeros((dim,), dtype)
        if init_values is not None and init_values > 0:
            self.gamma_1 = init_values * jnp.ones((dim,), dtype)
            self.gamma_2 = init_values * jnp.ones((dim,), dtype)
        else:
            self.gamma_1, self.gamma_2 = None, None

    # -- glue helpers ---------------------------------------------------------
    def _drop_path_row_scale(self, B, N, key):
        """Per-row (B*N, 1) f32 scale: floor(keep_prob + U[0,1)) / keep_prob, or 1.0 in eval."""
        if self.training and (self.drop_path_prob is not None) and self.drop_path_prob > 0.0:
            keep_prob = 1.0 - float(self.drop_path_prob)
            u = jax.random.uniform(key, (B,), dtype=jnp.float32)   # torch.rand analogue (glue)
            s = jnp.floor(keep_prob + u) / keep_prob
        else:
            s = jnp.ones((B,), jnp.float32)
        return jnp.repeat(s, N).reshape(B * N, 1)

    @staticmethod
    def _fold_gamma(w, b, gamma):
        """Fold LayerScale into the preceding linear: (x@W + b)*g == x@(W*g) + b*g."""
        if gamma is None:
            return w, b
        g = gamma.astype(jnp.float32)
        w_f = (w.astype(jnp.float32) * g[None, :]).astype(w.dtype)
        b_f = (b.astype(jnp.float32) * g).astype(b.dtype)
        return w_f, b_f

    # -- forward --------------------------------------------------------------
    def __call__(self, x, key):
        B, N, C = x.shape
        H, D, AHD = self.num_heads, self.head_dim, self.all_head_dim
        M = B * N
        k1, k2 = jax.random.split(key)

        x2 = x.reshape(M, C)

        # ---- attention branch:  fused LN+qkv -> attention -> fused proj+LayerScale+DropPath+residual
        if self.q_bias is not None:
            qkv_bias = jnp.concatenate(
                [self.q_bias, jnp.zeros_like(self.v_bias), self.v_bias])
        else:
            qkv_bias = jnp.zeros((3 * AHD,), x.dtype)
        qkv = ln_linear(x2, self.ln1_w, self.ln1_b, self.qkv_w, qkv_bias)   # (M, 3*AHD)
        # single XLA transpose to the (3, B, H, N, D) attention layout (glue)
        # TODO(synk): write qkv directly in (3,B,H,N,D) via out_specs to remove this transpose too.
        qkv = qkv.reshape(B, N, 3, H, D).transpose(2, 0, 3, 1, 4)
        q, k, v = qkv[0], qkv[1], qkv[2]
        ctx = attention_core(q, k, v, self.scale)                            # (B, N, AHD)
        ctx2 = ctx.reshape(M, AHD)                                           # free reshape

        scale1 = self._drop_path_row_scale(B, N, k1)
        proj_w, proj_b = self._fold_gamma(self.proj_w, self.proj_b, self.gamma_1)
        x2 = linear_residual_droppath(ctx2, proj_w, proj_b, x2, scale1)      # (M, C)

        # ---- MLP branch:  fused LN+fc1+GELU -> fused fc2+LayerScale+DropPath+residual
        h = ln_linear(x2, self.ln2_w, self.ln2_b, self.fc1_w, self.fc1_b, activation="gelu")
        scale2 = self._drop_path_row_scale(B, N, k2)
        fc2_w, fc2_b = self._fold_gamma(self.fc2_w, self.fc2_b, self.gamma_2)
        x2 = linear_residual_droppath(h, fc2_w, fc2_b, x2, scale2)           # (M, C)

        return x2.reshape(B, N, C)


# ----------------------------------------------------------------------------- pure-JAX reference
def block_reference(x, blk, u1, u2):
    hp = lax.Precision.HIGHEST
    B, N, C = x.shape
    H, D = blk.num_heads, blk.head_dim

    def ln(v, w, b, eps=1e-5):
        mu = v.mean(-1, keepdims=True)
        var = ((v - mu) ** 2).mean(-1, keepdims=True)
        return (v - mu) / jnp.sqrt(var + eps) * w + b

    def drop(y, u):
        if not blk.training or not blk.drop_path_prob:
            return y
        keep = 1.0 - blk.drop_path_prob
        mask = jnp.floor(keep + u).reshape(B, 1, 1)
        return y / keep * mask

    g1 = blk.gamma_1 if blk.gamma_1 is not None else 1.0
    g2 = blk.gamma_2 if blk.gamma_2 is not None else 1.0

    h = ln(x, blk.ln1_w, blk.ln1_b)
    if blk.q_bias is not None:
        qkv_b = jnp.concatenate([blk.q_bias, jnp.zeros_like(blk.v_bias), blk.v_bias])
    else:
        qkv_b = 0.0
    qkv = jnp.dot(h, blk.qkv_w, precision=hp) + qkv_b
    qkv = qkv.reshape(B, N, 3, H, D).transpose(2, 0, 3, 1, 4)
    q, k, v = qkv[0] * blk.scale, qkv[1], qkv[2]
    attn = jnp.einsum("bhqd,bhkd->bhqk", q, k, precision=hp)
    attn = jax.nn.softmax(attn, axis=-1)
    ctx = jnp.einsum("bhqk,bhkd->bhqd", attn, v, precision=hp)
    ctx = ctx.transpose(0, 2, 1, 3).reshape(B, N, H * D)
    attn_out = jnp.dot(ctx, blk.proj_w, precision=hp) + blk.proj_b
    x = x + drop(g1 * attn_out, u1)

    h = ln(x, blk.ln2_w, blk.ln2_b)
    h = jax.nn.gelu(jnp.dot(h, blk.fc1_w, precision=hp) + blk.fc1_b, approximate=False)
    mlp_out = jnp.dot(h, blk.fc2_w, precision=hp) + blk.fc2_b
    x = x + drop(g2 * mlp_out, u2)
    return x


# ----------------------------------------------------------------------------- demo / self-check
if __name__ == "__main__":
    root = jax.random.PRNGKey(0)
    kx, kparam, kdrop = jax.random.split(root, 3)

    B, N, C, H = 2, 8, 32, 4
    x = jax.random.normal(kx, (B, N, C), dtype=jnp.float32)

    blk = Block(dim=C, num_heads=H, mlp_ratio=4.0, qkv_bias=True,
                drop_path=0.25, init_values=0.5, key=kparam)

    # training mode (stochastic depth active)
    blk.training = True
    y = jax.block_until_ready(blk(x, kdrop))
    assert y.shape == x.shape and y.dtype == x.dtype

    k1, k2 = jax.random.split(kdrop)
    u1 = jax.random.uniform(k1, (B,), dtype=jnp.float32)
    u2 = jax.random.uniform(k2, (B,), dtype=jnp.float32)
    y_ref = block_reference(x, blk, u1, u2)
    assert jnp.allclose(y, y_ref, atol=5e-3, rtol=5e-3), float(jnp.max(jnp.abs(y - y_ref)))

    # eval mode (DropPath -> identity)
    blk.training = False
    y_eval = jax.block_until_ready(blk(x, kdrop))
    y_eval_ref = block_reference(x, blk, u1, u2)
    assert jnp.allclose(y_eval, y_eval_ref, atol=5e-3, rtol=5e-3)

    print("KERNEL_OK")
</pallas_src>

<mosaic_0001>
module attributes {stable_mosaic.version = 11 : i64} {
  func.func @_ln_linear_kernel(%arg0: i32, %arg1: i32, %arg2: memref<16x32xf32, #tpu.memory_space<vmem>>, %arg3: memref<1x32xf32, #tpu.memory_space<vmem>>, %arg4: memref<1x32xf32, #tpu.memory_space<vmem>>, %arg5: memref<32x96xf32, #tpu.memory_space<vmem>>, %arg6: memref<1x96xf32, #tpu.memory_space<vmem>>, %arg7: memref<16x96xf32, #tpu.memory_space<vmem>>) attributes {dimension_semantics = [#tpu.dimension_semantics<parallel>, #tpu.dimension_semantics<parallel>], iteration_bounds = array<i64: 1, 1>, scalar_prefetch = 0 : i64, scratch_operands = 0 : i64, tpu.core_type = #tpu.core_type<tc>, window_params = [{transform_indices = @transform_0, window_bounds = array<i64: 16, 32>}, {pipeline_mode = #tpu.pipeline_mode<synchronous>, transform_indices = @transform_1, window_bounds = array<i64: 1, 32>}, {pipeline_mode = #tpu.pipeline_mode<synchronous>, transform_indices = @transform_2, window_bounds = array<i64: 1, 32>}, {transform_indices = @transform_3, window_bounds = array<i64: 32, 96>}, {transform_indices = @transform_4, window_bounds = array<i64: 1, 96>}, {transform_indices = @transform_5, window_bounds = array<i64: 16, 96>}]} {
    %c0 = arith.constant 0 : index
    %c0_0 = arith.constant 0 : index
    %0 = vector.load %arg2[%c0, %c0_0] : memref<16x32xf32, #tpu.memory_space<vmem>>, vector<16x32xf32>
    %cst = arith.constant dense<0.000000e+00> : vector<16xf32>
    %1 = vector.multi_reduction <add>, %0, %cst [1] : vector<16x32xf32> to vector<16xf32>
    %2 = vector.shape_cast %1 : vector<16xf32> to vector<16x1xf32>
    %cst_1 = arith.constant 3.200000e+01 : f32
    %3 = vector.broadcast %cst_1 : f32 to vector<16x1xf32>
    %4 = arith.divf %2, %3 : vector<16x1xf32>
    %5 = vector.broadcast %4 : vector<16x1xf32> to vector<16x32xf32>
    %6 = arith.subf %0, %5 : vector<16x32xf32>
    %7 = arith.mulf %6, %6 : vector<16x32xf32>
    %cst_2 = arith.constant dense<0.000000e+00> : vector<16xf32>
    %8 = vector.multi_reduction <add>, %7, %cst_2 [1] : vector<16x32xf32> to vector<16xf32>
    %9 = vector.shape_cast %8 : vector<16xf32> to vector<16x1xf32>
    %cst_3 = arith.constant 3.200000e+01 : f32
    %10 = vector.broadcast %cst_3 : f32 to vector<16x1xf32>
    %11 = arith.divf %9, %10 : vector<16x1xf32>
    %cst_4 = arith.constant 9.99999974E-6 : f32
    %12 = vector.broadcast %cst_4 : f32 to vector<16x1xf32>
    %13 = arith.addf %11, %12 : vector<16x1xf32>
    %14 = math.rsqrt %13 : vector<16x1xf32>
    %15 = vector.broadcast %14 : vector<16x1xf32> to vector<16x32xf32>
    %16 = arith.mulf %6, %15 : vector<16x32xf32>
    %c0_5 = arith.constant 0 : index
    %c0_6 = arith.constant 0 : index
    %17 = vector.load %arg3[%c0_5, %c0_6] : memref<1x32xf32, #tpu.memory_space<vmem>>, vector<1x32xf32>
    %18 = vector.broadcast %17 : vector<1x32xf32> to vector<16x32xf32>
    %19 = arith.mulf %16, %18 : vector<16x32xf32>
    %c0_7 = arith.constant 0 : index
    %c0_8 = arith.constant 0 : index
    %20 = vector.load %arg4[%c0_7, %c0_8] : memref<1x32xf32, #tpu.memory_space<vmem>>, vector<1x32xf32>
    %21 = vector.broadcast %20 : vector<1x32xf32> to vector<16x32xf32>
    %22 = arith.addf %19, %21 : vector<16x32xf32>
    %c0_9 = arith.constant 0 : index
    %c0_10 = arith.constant 0 : index
    %23 = vector.load %arg5[%c0_9, %c0_10] : memref<32x96xf32, #tpu.memory_space<vmem>>, vector<32x96xf32>
    %cst_11 = arith.constant dense<0.000000e+00> : vector<16x96xf32>
    %24 = tpu.matmul %22, %23, %cst_11 {dimension_numbers = #tpu.dot_dimension_numbers<[1], [0], [0], [1], [0, 0, 1, 1], [], []>} : vector<16x32xf32>, vector<32x96xf32>, vector<16x96xf32> -> vector<16x96xf32>
    %c0_12 = arith.constant 0 : index
    %c0_13 = arith.constant 0 : index
    %25 = vector.load %arg6[%c0_12, %c0_13] : memref<1x96xf32, #tpu.memory_space<vmem>>, vector<1x96xf32>
    %26 = vector.broadcast %25 : vector<1x96xf32> to vector<16x96xf32>
    %27 = arith.addf %24, %26 : vector<16x96xf32>
    %c0_14 = arith.constant 0 : index
    %c0_15 = arith.constant 0 : index
    %28 = vector.load %arg7[%c0_14, %c0_15] : memref<16x96xf32, #tpu.memory_space<vmem>>, vector<16x96xf32>
    tpu.vector_store %arg7[%c0_14, %c0_15], %27 {strides = array<i32>} : memref<16x96xf32, #tpu.memory_space<vmem>>, vector<16x96xf32>,
    return
  }
  func.func @transform_0(%arg0: i32, %arg1: i32) -> (i32, i32) {
    %c0_i32 = arith.constant 0 : i32
    %c0_i32_0 = arith.constant 0 : i32
    return %arg0, %c0_i32 : i32, i32
  }
  func.func @transform_1(%arg0: i32, %arg1: i32) -> (i32, i32) {
    %c0_i32 = arith.constant 0 : i32
    %c0_i32_0 = arith.constant 0 : i32
    %c0_i32_1 = arith.constant 0 : i32
    return %c0_i32, %c0_i32_0 : i32, i32
  }
  func.func @transform_2(%arg0: i32, %arg1: i32) -> (i32, i32) {
    %c0_i32 = arith.constant 0 : i32
    %c0_i32_0 = arith.constant 0 : i32
    %c0_i32_1 = arith.constant 0 : i32
    return %c0_i32, %c0_i32_0 : i32, i32
  }
  func.func @transform_3(%arg0: i32, %arg1: i32) -> (i32, i32) {
    %c0_i32 = arith.constant 0 : i32
    %c0_i32_0 = arith.constant 0 : i32
    return %c0_i32, %arg1 : i32, i32
  }
  func.func @transform_4(%arg0: i32, %arg1: i32) -> (i32, i32) {
    %c0_i32 = arith.constant 0 : i32
    %c0_i32_0 = arith.constant 0 : i32
    return %c0_i32, %arg1 : i32, i32
  }
  func.func @transform_5(%arg0: i32, %arg1: i32) -> (i32, i32) {
    %c0_i32 = arith.constant 0 : i32
    return %arg0, %arg1 : i32, i32
  }
}

</mosaic_0001>

<bundles_post_ra>
// kernel: tpu_custom_call.1
= control target key start
LH: loop header
LB: loop body
LE: loop exit
PB: predicated region body
PF: predicated region fallthrough
CT: control target
= control target key end

     0   :  { %10 = vsyncpa [#allocation3], 0  ;;  %s416_s0 = inlined_call_operand.hbm [shape: f32[16,32], index: 0, kind: input, shape index: {}]   ;;  %s417_s1 = inlined_call_operand.vmem [shape: f32[1,32], index: 1, kind: input, shape index: {}]   ;;  %s418_s2 = inlined_call_operand.vmem [shape: f32[1,32], index: 2, kind: input, shape index: {}]   ;;  %s419_s3 = inlined_call_operand.hbm [shape: f32[32,96], index: 3, kind: input, shape index: {}]   ;;  %s420_s4 = inlined_call_operand.vmem [shape: f32[1,96], index: 4, kind: input, shape index: {}]   ;;  %s421_s5 = inlined_call_operand.hbm [shape: f32[16,96], index: 5, kind: output, shape index: {}]  }
   0x1   :  { %11 = vsyncpa [#allocation6], 0 }
   0x2   :  { %12 = vsyncpa [#allocation4], 0  ;;  %s321_s18 = smov [#allocation2]   ;;  %s249_s22 = scalar_lea.hbm %s416_s0, 256 }
   0x3   :  { %s18_s19 = sshll.u32 %s321_s18, 4  ;;  %p250_p0 = scmp.ne.s32.totalorder %s416_s0, %s249_s22  ;;  %s19_s19 = int_to_ptr.vmem [resolvable:$true] %s18_s19 }
   0x4   :  { %p253_p1 = scmp.lt.u32.totalorder %s249_s22, %s416_s0 }
   0x6   :  { %p255_p2 = pnand %p253_p1, %p250_p0 }
   0x8   :  { %258 = shalt.err (!%p255_p2)
}
   0x9   :  { %s259_s27 = scalar_lea.vmem %s19_s19, 256  ;;  %p264_p4 = scmp.lt.s32.totalorder %s19_s19, %s19_s19 }
   0xa   :  { %p260_p3 = scmp.ne.s32.totalorder %s19_s19, %s259_s27  ;;  %p265_p5 = scmp.lt.s32.totalorder %s259_s27, %s259_s27 }
   0xc   :  { %p266_p6 = por %p265_p5, %p264_p4 }
   0xe   :  { %p267_p7 = pnand %p266_p6, %p260_p3 }
  0x10   :  { %270 = shalt.err (!%p267_p7)
}
  0x11   :  { %s322_s28 = smov 128   ;;  %s323_s29 = smov 8  }
  0x12   :  { %24 = dma.hbm_to_vmem [thread:$0]  %s416_s0, 256, %s19_s19, [#allocation3], %s322_s28, %s322_s28, %s323_s29  }
  0x13   :  { %s324_s7 = smov [#allocation5]   ;;  %s271_s11 = scalar_lea.hbm %s419_s3, 512 }
  0x14   :  { %s34_s8 = sshll.u32 %s324_s7, 4  ;;  %p272_p8 = scmp.ne.s32.totalorder %s419_s3, %s271_s11  ;;  %s35_s8 = int_to_ptr.vmem [resolvable:$true] %s34_s8 }
  0x15   :  { %p275_p9 = scmp.lt.u32.totalorder %s271_s11, %s419_s3 }
  0x17   :  { %p277_p10 = pnand %p275_p9, %p272_p8 }
  0x19   :  { %280 = shalt.err (!%p277_p10)
}
  0x1a   :  { %s281_s16 = scalar_lea.vmem %s35_s8, 512  ;;  %p286_p12 = scmp.lt.s32.totalorder %s35_s8, %s35_s8 }
  0x1b   :  { %p282_p11 = scmp.ne.s32.totalorder %s35_s8, %s281_s16  ;;  %p287_p13 = scmp.lt.s32.totalorder %s281_s16, %s281_s16 }
  0x1d   :  { %p288_p0 = por %p287_p13, %p286_p12 }
  0x1f   :  { %p289_p1 = pnand %p288_p0, %p282_p11 }
  0x21   :  { %292 = shalt.err (!%p289_p1)
}
  0x22   :  { %40 = dma.hbm_to_vmem [thread:$0]  %s419_s3, 512, %s35_s8, [#allocation6], %s322_s28, %s322_s28, %s323_s29  }
  0x23   :  { %315 = dma.done.wait [#allocation3], 256  }
  0x24   :  { %316 = vsyncadd [#allocation3], 4294967040 }
  0x25   :  { %317 = dma.done.wait [#allocation6], 512  }
  0x26   :  { %318 = vsyncadd [#allocation6], 4294966784  ;;  %vm51_vm0 = vcmask 261120   ;;  %v49_v0 = vld [vmem:[#allocation2] sm:$0xff]  ;;  %v50_v1 = vld [vmem:[#allocation2 + $0x8] sm:$0xff]  ;;  %vm189_vm1 = vcmask 785408  }
  0x27   :  { %v52_v2 = vsel %vm51_vm0, %v49_v0, 0.0  ;;  %v55_v3 = vsel %vm51_vm0, %v50_v1, 0.0  ;;  %v97_v14 = vld [vmem:[#allocation5] sm:$0xff]  ;;  %v98_v15 = vld [vmem:[#allocation5 + $0x8] sm:$0xff]  ;;  %v99_v16 = vld [vmem:[#allocation5 + $0x10] sm:$0xff] }
  0x28   :  { %53 = vadd.xlane.f32.xlu0 %v52_v2  ;;  %v232_v17 = vpack.c.bf16 %v98_v15, %v97_v14  ;;  %v100_v18 = vld [vmem:[#allocation5 + $0x18] sm:$0xff]  ;;  %v210_v27 = vld [vmem:[%s417_s1] ss:$0 sm:$0xff]  ;;  %s325_s1 = smov [#allocation7]  }
  0x29   :  { %v236_v19 = vpack.c.bf16 %v100_v18, %v99_v16  ;;  %v211_v29 = vld [vmem:[%s418_s2] ss:$0 sm:$0xff]  ;;  %s197_s23 = sshll.u32 %s325_s1, 4  ;;  %s198_s23 = int_to_ptr.vmem [resolvable:$true] %s197_s23 }
  0x2a   :  { %233 = vmatprep.subr.bf16.mxu0 %v232_v17  ;;  %v212_v36 = vld [vmem:[%s420_s4] ss:$0 sm:$0xff]  ;;  %s293_s2 = scalar_lea.vmem %s198_s23, 256  ;;  %p298_p3 = scmp.lt.s32.totalorder %s198_s23, %s198_s23 }
  0x2b   :  { %235 = vmatpush3.bf16.msra.mxu0 %v232_v17  ;;  %p294_p2 = scmp.ne.s32.totalorder %s198_s23, %s293_s2  ;;  %p299_p4 = scmp.lt.s32.totalorder %s293_s2, %s293_s2 }
  0x2c   :  { %56 = vadd.xlane.f32.xlu0 %v55_v3  ;;  %237 = vmatprep.subr.bf16.mxu0 %v236_v19 }
  0x2d   :  { %p300_p5 = por %p299_p4, %p298_p3 }
  0x2f   :  { %239 = vmatpush3.bf16.msra.mxu0 %v236_v19  ;;  %p301_p6 = pnand %p300_p5, %p294_p2 }
  0xb5   :  { %v54_v4 = vpop.xlane.xlu0 %53 }
  0xb6   :  { %v59_v5 = vmul.f32 0.03125, %v54_v4 }
  0xb8   :  { %v61_v6 = vsub.f32 %v49_v0, %v59_v5 }
  0xb9   :  { %v57_v7 = vpop.xlane.xlu0 %56 }
  0xba   :  { %v60_v8 = vmul.f32 0.03125, %v57_v7  ;;  %v63_v9 = vmul.f32 %v61_v6, %v61_v6 }
  0xbc   :  { %v62_v10 = vsub.f32 %v50_v1, %v60_v8  ;;  %v65_v11 = vsel %vm51_vm0, %v63_v9, 0.0 }
  0xbd   :  { %66 = vadd.xlane.f32.xlu1 %v65_v11 }
  0xbe   :  { %v64_v12 = vmul.f32 %v62_v10, %v62_v10 }
  0xc0   :  { %v68_v13 = vsel %vm51_vm0, %v64_v12, 0.0 }
  0xc1   :  { %69 = vadd.xlane.f32.xlu1 %v68_v13 }
 0x14a   :  { %v67_v20 = vpop.xlane.xlu1 %66 }
 0x14b   :  { %v71_v21 = vmul.f32 0.03125, %v67_v20 }
 0x14d   :  { %v73_v22 = vadd.f32 1e-05, %v71_v21 }
 0x14e   :  { %v70_v23 = vpop.xlane.xlu1 %69 }
 0x14f   :  { %245 = vrsqrt.f32 %v73_v22  ;;  %v72_v24 = vmul.f32 0.03125, %v70_v23 }
 0x151   :  { %v74_v25 = vadd.f32 1e-05, %v72_v24 }
 0x153   :  { %247 = vrsqrt.f32 %v74_v25 }
 0x159   :  { %v246_v26 = vpop.eup %245 }
 0x15a   :  { %v77_v28 = vmul.f32 %v246_v26, %v61_v6 }
 0x15c   :  { %v86_v30 = vmul.f32 %v210_v27, %v77_v28 }
 0x15d   :  { %v248_v31 = vpop.eup %247 }
 0x15e   :  { %v78_v32 = vmul.f32 %v248_v31, %v62_v10  ;;  %v95_v33 = vadd.f32 %v211_v29, %v86_v30 }
 0x160   :  { %v87_v34 = vmul.f32 %v210_v27, %v78_v32  ;;  %229 = vmatprep.mubr.msk.f32.mxu0 %vm51_vm0, %v95_v33 }
 0x162   :  { %v96_v35 = vadd.f32 %v211_v29, %v87_v34 }
 0x164   :  { %230 = vmatmul.mubr.msk.f32.vlgmr.msra.gmra.mrb[0].mxu0 %vm51_vm0, %v96_v35 }
 0x237   :  { %v231_v37 = vpop.f32.mrb[0].mxu0 }
 0x238   :  { %v186_v38 = vadd.f32 %v231_v37, %v212_v36  ;;  %v180_v39 = vpop.f32.mrb[1].mxu0 }
 0x239   :  { %v181_v40 = vadd.f32 %v212_v36, %v180_v39 }
 0x23a   :  { %191 = vst.msk [vmem:[#allocation7 + $0x8] sm:$0xff] %vm189_vm1, %v186_v38 }
 0x23b   :  { %190 = vst.msk [vmem:[#allocation7] sm:$0xff] %vm189_vm1, %v181_v40 }
 0x23c   :  { %304 = shalt.err (!%p301_p6)
}
 0x23d   :  { %s305_s4 = scalar_lea.hbm %s421_s5, 256 }
 0x23e   :  { %p306_p7 = scmp.ne.s32.totalorder %s421_s5, %s305_s4  ;;  %p309_p8 = scmp.lt.u32.totalorder %s305_s4, %s421_s5 }
 0x240   :  { %p311_p9 = pnand %p309_p8, %p306_p7 }
 0x242   :  { %314 = shalt.err (!%p311_p9)
}
 0x243   :  { %203 = dma.vmem_to_hbm [thread:$0]  %s198_s23, 256, %s421_s5, [#allocation4], %s322_s28, %s322_s28, %s323_s29  }
 0x244   :  { %319 = dma.done.wait [#allocation4], 256  }
 0x245   :  { %320 = vsyncadd [#allocation4], 4294967040 }
 0x246   :  { %207 = vsyncpa [#allocation3], 1 }
 0x247   :  { %208 = vsyncpa [#allocation6], 1 }
 0x248   :  { %209 = vsyncpa [#allocation4], 1 }

</bundles_post_ra>
